<compile_context>
chip_gen: v5e
topology: v5e:2x2
jax: 0.10.0
libtpu: 0.0.40
codegen_flags: <defaults>
</compile_context>

<pallas_src>
import functools

import jax
import jax.numpy as jnp
from jax.experimental import pallas as pl
from jax.experimental.pallas import tpu as pltpu


def _round_up(x, m):
    return ((x + m - 1) // m) * m


def _tpu_hints():
    """Best-effort generation detection (never raises)."""
    kind = ""
    try:
        kind = jax.devices()[0].device_kind.lower()
    except Exception:
        pass
    is_v7 = "7" in kind                       # v7x: 2 TCs, 64 MiB VMEM, 3.2 TB/s
    phys_vmem = (64 if is_v7 else 128) * 1024 * 1024
    return is_v7, phys_vmem


# --------------------------------------------------------------------------
# Kernel 1: whole vocabulary fits in a single lane-dense class tile.
# --------------------------------------------------------------------------
def _ce_kernel_single_tile(logit_ref, target_ref, out_ref, *, num_classes):
    rt, tc = logit_ref.shape
    n_chunks = tc // 128
    in_dt = logit_ref.dtype
    minus_inf = jnp.asarray(-jnp.inf, dtype=in_dt)

    lane = jax.lax.broadcasted_iota(jnp.int32, (rt, 128), 1)     # 0..127 per lane
    t = target_ref[...]                                          # (rt, 1) int32
    # Chunk ci's column (ci*128 + lane) equals the target column iff
    # tlane == ci*128: one compare per chunk, no per-element index adds.
    tlane = jnp.broadcast_to(t, (rt, 128)) - lane

    # ---- pass 1: per-lane max over 128-wide chunks + target-logit gather ----
    # (max / select stay in the input dtype: exact, halves VALU work for bf16)
    run_max = None
    tgt_lane = jnp.zeros((rt, 128), in_dt)
    for ci in range(n_chunks):
        xc = logit_ref[:, ci * 128:(ci + 1) * 128]
        if (ci + 1) * 128 > num_classes:          # static: only the tail chunk pays
            xm = jnp.where(lane < (num_classes - ci * 128), xc, minus_inf)
        else:
            xm = xc
        run_max = xm if run_max is None else jnp.maximum(run_max, xm)
        tgt_lane = jnp.where(tlane == ci * 128, xc, tgt_lane)

    m_row = jnp.max(run_max.astype(jnp.float32), axis=-1, keepdims=True)   # (rt, 1)
    m_b = jnp.broadcast_to(m_row, (rt, 128))      # hoisted lane-broadcast

    # ---- pass 2: exp-accumulate per lane, collapse lanes once ----
    l_lane = jnp.zeros((rt, 128), jnp.float32)
    for ci in range(n_chunks):
        xc = logit_ref[:, ci * 128:(ci + 1) * 128].astype(jnp.float32)
        p = jnp.exp(xc - m_b)
        if (ci + 1) * 128 > num_classes:          # static tail gate
            p = jnp.where(lane < (num_classes - ci * 128), p, 0.0)
        l_lane = l_lane + p

    l_row = jnp.sum(l_lane, axis=-1, keepdims=True)
    t_row = jnp.sum(tgt_lane.astype(jnp.float32), axis=-1, keepdims=True)
    out_ref[...] = m_row + jnp.log(l_row) - t_row


# --------------------------------------------------------------------------
# Kernel 2: streaming online-logsumexp over class tiles, lane-dense state.
# --------------------------------------------------------------------------
def _ce_kernel_multi_tile(logit_ref, target_ref, out_ref, m_ref, l_ref, tgt_ref,
                          *, num_classes, class_tile, masked):
    k = pl.program_id(1)
    rt, tc = logit_ref.shape
    n_chunks = tc // 128
    in_dt = logit_ref.dtype
    minus_inf = jnp.asarray(-jnp.inf, dtype=in_dt)

    @pl.when(k == 0)
    def _init():
        m_ref[...] = jnp.full(m_ref.shape, -jnp.inf, jnp.float32)
        l_ref[...] = jnp.zeros(l_ref.shape, jnp.float32)
        tgt_ref[...] = jnp.zeros(tgt_ref.shape, tgt_ref.dtype)

    lane = jax.lax.broadcasted_iota(jnp.int32, (rt, 128), 1)
    t_local = target_ref[...] - k * class_tile                  # (rt, 1) int32
    tlane = jnp.broadcast_to(t_local, (rt, 128)) - lane
    if masked:
        # Only compiled in when C % class_tile != 0 (static specialization).
        bound = num_classes - k * class_tile                    # traced scalar

    # ---- pass 1: per-lane max over chunks + target-logit gather ----
    tgt_lane = tgt_ref[...]
    run_max = None
    for ci in range(n_chunks):
        xc = logit_ref[:, ci * 128:(ci + 1) * 128]
        if masked:
            xm = jnp.where(lane < (bound - ci * 128), xc, minus_inf)
        else:
            xm = xc
        run_max = xm if run_max is None else jnp.maximum(run_max, xm)
        # Overwrite-gather: at most one (tile, chunk, lane) matches a valid target.
        tgt_lane = jnp.where(tlane == ci * 128, xc, tgt_lane)
    tgt_ref[...] = tgt_lane

    # ---- online per-lane logsumexp: rescale previous sum once per tile ----
    # (only (rt,128) elements; tile 0 is always fully valid so m_prev is finite
    #  before any masked tail tile -> no -inf minus -inf NaNs.)
    m_prev = m_ref[...]
    m_new = jnp.maximum(m_prev, run_max.astype(jnp.float32))
    l_lane = l_ref[...] * jnp.exp(m_prev - m_new)

    # ---- pass 2: exp-accumulate this tile's chunks ----
    for ci in range(n_chunks):
        xc = logit_ref[:, ci * 128:(ci + 1) * 128].astype(jnp.float32)
        p = jnp.exp(xc - m_new)
        if masked:
            p = jnp.where(lane < (bound - ci * 128), p, 0.0)
        l_lane = l_lane + p

    m_ref[...] = m_new
    l_ref[...] = l_lane

    @pl.when(k == pl.num_programs(1) - 1)
    def _finalize():
        # Collapse the 128 per-lane accumulators once per row tile.
        m_row = jnp.max(m_new, axis=-1, keepdims=True)                      # (rt,1)
        l_row = jnp.sum(l_lane * jnp.exp(m_new - m_row), axis=-1, keepdims=True)
        t_row = jnp.sum(tgt_lane.astype(jnp.float32), axis=-1, keepdims=True)
        out_ref[...] = m_row + jnp.log(l_row) - t_row


# --------------------------------------------------------------------------
# Wrapper
# --------------------------------------------------------------------------
def cross_entropy_loss_none(logit, target, num_classes=None, *,
                            row_tile=None, class_tile=None):
    """Per-sample cross-entropy (PyTorch CrossEntropyLoss(reduction='none')).

    logit:  (N, C) float array (f32 or bf16; do NOT pre-cast bf16 to f32)
    target: (N,)   integer class indices in [0, C)
    returns (N,) float32 losses.  `num_classes` is accepted for signature
    parity with the PyTorch module but unused (C comes from logit.shape).
    """
    N, C = logit.shape
    del num_classes  # unused (the module also ignores it)

    itemsize = jnp.dtype(logit.dtype).itemsize
    # Sublane packing multiple for the logit dtype (f32: 8, bf16: 16, int8: 32).
    sub = {4: 8, 2: 16, 1: 32}.get(itemsize, 8)
    is_v7, phys_vmem = _tpu_hints()
    vmem_cap = (phys_vmem * 3) // 4          # ~25% headroom for compiler scratch

    C128 = _round_up(C, 128)
    N_sub = _round_up(max(N, 1), sub)
    tc_target = class_tile if class_tile is not None else (8192 if is_v7 else 4096)
    tc_target = max(512, _round_up(tc_target, 128))   # keep DMA segments >= 2 KiB

    target2d = target.astype(jnp.int32).reshape(N, 1)

    # ---------------------------------------------------------------- single
    if C128 <= tc_target:
        tc = C128
        if row_tile is None:
            # Aim for ~2 MiB (4 MiB on v7x) blocks to amortize per-step overhead.
            tgt_block = (4 << 20) if is_v7 else (2 << 20)
            rt = max(sub, min(1024, tgt_block // max(1, tc * itemsize)))
        else:
            rt = row_tile
        rt = min(_round_up(rt, sub), N_sub)
        if is_v7 and N_sub >= 2 * sub and pl.cdiv(N, rt) < 2:
            rt = _round_up(pl.cdiv(N, 2), sub)        # keep both v7x TCs busy

        vmem_need = 2 * rt * tc * itemsize + rt * tc * 4 + (4 << 20)
        vmem_limit = int(min(vmem_cap, max(32 << 20, vmem_need)))

        kernel = functools.partial(_ce_kernel_single_tile, num_classes=C)
        out = pl.pallas_call(
            kernel,
            out_shape=jax.ShapeDtypeStruct((N, 1), jnp.float32),
            grid_spec=pltpu.PrefetchScalarGridSpec(
                num_scalar_prefetch=0,
                grid=(pl.cdiv(N, rt),),
                in_specs=[
                    pl.BlockSpec((rt, tc), lambda i: (i, 0)),   # logits
                    pl.BlockSpec((rt, 1), lambda i: (i, 0)),    # targets
                ],
                out_specs=pl.BlockSpec((rt, 1), lambda i: (i, 0)),
            ),
            compiler_params=pltpu.CompilerParams(
                dimension_semantics=("parallel",),
                vmem_limit_bytes=vmem_limit,
            ),
        )(logit, target2d)
        return out.reshape(N)

    # ----------------------------------------------------------------- multi
    # Prefer a class tile that divides C exactly (multiple of 128, >= 512) so
    # the tail-masking code is statically compiled out.
    tc = 0
    if C % 128 == 0:
        cand = tc_target
        while cand >= 512:
            if C % cand == 0:
                tc = cand
                break
            cand -= 128
    if tc == 0:
        tc = tc_target
    masked = (C % tc) != 0

    rt = row_tile if row_tile is not None else 128
    rt = min(_round_up(rt, sub), N_sub)
    if is_v7 and N_sub >= 2 * sub and pl.cdiv(N, rt) < 2:
        rt = _round_up(pl.cdiv(N, 2), sub)            # keep both v7x TCs busy

    # Double-buffered input block + f32 intermediates / spill slack + scratch.
    vmem_need = (2 * rt * tc * itemsize + rt * tc * 4
                 + 6 * rt * 128 * 4 + (4 << 20))
    vmem_limit = int(min(vmem_cap, max(32 << 20, vmem_need)))

    kernel = functools.partial(_ce_kernel_multi_tile, num_classes=C,
                               class_tile=tc, masked=masked)
    out = pl.pallas_call(
        kernel,
        out_shape=jax.ShapeDtypeStruct((N, 1), jnp.float32),
        grid_spec=pltpu.PrefetchScalarGridSpec(
            num_scalar_prefetch=0,
            grid=(pl.cdiv(N, rt), pl.cdiv(C, tc)),
            in_specs=[
                pl.BlockSpec((rt, tc), lambda i, k: (i, k)),    # logits
                pl.BlockSpec((rt, 1), lambda i, k: (i, 0)),     # targets
            ],
            out_specs=pl.BlockSpec((rt, 1), lambda i, k: (i, 0)),
            scratch_shapes=[
                pltpu.VMEM((rt, 128), jnp.float32),   # running per-lane max
                pltpu.VMEM((rt, 128), jnp.float32),   # running per-lane exp-sum
                pltpu.VMEM((rt, 128), logit.dtype),   # gathered target logit
            ],
        ),
        compiler_params=pltpu.CompilerParams(
            dimension_semantics=("parallel", "arbitrary"),
            vmem_limit_bytes=vmem_limit,
        ),
    )(logit, target2d)
    return out.reshape(N)


# --------------------------------------------------------------------------
# Self-test
# --------------------------------------------------------------------------
if __name__ == "__main__":
    key = jax.random.PRNGKey(0)
    ks = jax.random.split(key, 8)

    def ref_loss(lg, tg):
        lg = lg.astype(jnp.float32)
        return (jax.nn.logsumexp(lg, axis=-1)
                - jnp.take_along_axis(lg, tg[:, None].astype(jnp.int32), axis=-1)[:, 0])

    # Case 1: tiny shape consistent with the module (batch=8, classes=32)
    #         -> single class-tile kernel with a masked tail chunk.
    N, C = 8, 32
    logit = jax.random.normal(ks[0], (N, C), dtype=jnp.float32)
    tgt = jax.random.randint(ks[1], (N,), 0, C, dtype=jnp.int32)
    loss = cross_entropy_loss_none(logit, tgt, C)
    jax.block_until_ready(loss)
    assert loss.shape == (N,)
    assert jnp.allclose(loss, ref_loss(logit, tgt), atol=1e-4, rtol=1e-4)

    # Case 2: multi class-tile, unmasked fast path (tc divides C), ragged rows.
    N2, C2 = 50, 1024
    logit2 = jax.random.normal(ks[2], (N2, C2), dtype=jnp.float32)
    tgt2 = jax.random.randint(ks[3], (N2,), 0, C2, dtype=jnp.int32)
    loss2 = cross_entropy_loss_none(logit2, tgt2, C2, class_tile=512)
    jax.block_until_ready(loss2)
    assert jnp.allclose(loss2, ref_loss(logit2, tgt2), atol=1e-4, rtol=1e-4)

    # Case 3: multi class-tile with a ragged class tail (masked fallback path).
    N3, C3 = 24, 1200
    logit3 = jax.random.normal(ks[4], (N3, C3), dtype=jnp.float32)
    tgt3 = jax.random.randint(ks[5], (N3,), 0, C3, dtype=jnp.int32)
    loss3 = cross_entropy_loss_none(logit3, tgt3, C3, class_tile=512)
    jax.block_until_ready(loss3)
    assert jnp.allclose(loss3, ref_loss(logit3, tgt3), atol=1e-4, rtol=1e-4)

    # Case 4: bf16 logits, single class-tile path, C a multiple of 128 (no mask).
    N4, C4 = 16, 384
    logit4 = jax.random.normal(ks[6], (N4, C4), dtype=jnp.float32).astype(jnp.bfloat16)
    tgt4 = jax.random.randint(ks[7], (N4,), 0, C4, dtype=jnp.int32)
    loss4 = cross_entropy_loss_none(logit4, tgt4, C4)
    jax.block_until_ready(loss4)
    assert jnp.allclose(loss4, ref_loss(logit4, tgt4), atol=5e-3, rtol=5e-3)

    print("KERNEL_OK")
</pallas_src>

<mosaic_0001>
module attributes {stable_mosaic.version = 11 : i64} {
  func.func @_ce_kernel_single_tile(%arg0: i32, %arg1: memref<8x128xf32, #tpu.memory_space<vmem>>, %arg2: memref<8x1xi32, #tpu.memory_space<vmem>>, %arg3: memref<8x1xf32, #tpu.memory_space<vmem>>) attributes {dimension_semantics = [#tpu.dimension_semantics<parallel>], iteration_bounds = array<i64: 1>, scalar_prefetch = 0 : i64, scratch_operands = 0 : i64, tpu.core_type = #tpu.core_type<tc>, window_params = [{transform_indices = @transform_0, window_bounds = array<i64: 8, 128>}, {transform_indices = @transform_1, window_bounds = array<i64: 8, 1>}, {transform_indices = @transform_2, window_bounds = array<i64: 8, 1>}]} {
    %0 = tpu.iota {dimensions = array<i32: 1>} : vector<8x128xi32>
    %c0 = arith.constant 0 : index
    %c0_0 = arith.constant 0 : index
    %1 = vector.load %arg2[%c0, %c0_0] : memref<8x1xi32, #tpu.memory_space<vmem>>, vector<8x1xi32>
    %2 = vector.shape_cast %1 : vector<8x1xi32> to vector<8x1xi32>
    %3 = vector.broadcast %2 : vector<8x1xi32> to vector<8x128xi32>
    %4 = arith.subi %3, %0 : vector<8x128xi32>
    %cst = arith.constant 0.000000e+00 : f32
    %5 = vector.broadcast %cst : f32 to vector<8x128xf32>
    %c0_1 = arith.constant 0 : index
    %c0_2 = arith.constant 0 : index
    %6 = vector.load %arg1[%c0_1, %c0_2] : memref<8x128xf32, #tpu.memory_space<vmem>>, vector<8x128xf32>
    %c32_i32 = arith.constant 32 : i32
    %7 = vector.broadcast %c32_i32 : i32 to vector<8x128xi32>
    %8 = arith.cmpi slt, %0, %7 : vector<8x128xi32>
    %cst_3 = arith.constant 0xFF800000 : f32
    %9 = vector.broadcast %cst_3 : f32 to vector<8x128xf32>
    %10 = arith.select %8, %6, %9 : vector<8x128xi1>, vector<8x128xf32>
    %c0_i32 = arith.constant 0 : i32
    %11 = vector.broadcast %c0_i32 : i32 to vector<8x128xi32>
    %12 = arith.cmpi eq, %4, %11 : vector<8x128xi32>
    %13 = arith.select %12, %6, %5 : vector<8x128xi1>, vector<8x128xf32>
    %cst_4 = arith.constant dense<0xFF800000> : vector<8xf32>
    %14 = vector.multi_reduction <maximumf>, %10, %cst_4 [1] : vector<8x128xf32> to vector<8xf32>
    %15 = vector.shape_cast %14 : vector<8xf32> to vector<8x1xf32>
    %16 = vector.shape_cast %15 : vector<8x1xf32> to vector<8x1xf32>
    %17 = vector.broadcast %16 : vector<8x1xf32> to vector<8x128xf32>
    %cst_5 = arith.constant 0.000000e+00 : f32
    %18 = vector.broadcast %cst_5 : f32 to vector<8x128xf32>
    %c0_6 = arith.constant 0 : index
    %c0_7 = arith.constant 0 : index
    %19 = vector.load %arg1[%c0_6, %c0_7] : memref<8x128xf32, #tpu.memory_space<vmem>>, vector<8x128xf32>
    %20 = arith.subf %19, %17 : vector<8x128xf32>
    %21 = math.exp %20 : vector<8x128xf32>
    %c32_i32_8 = arith.constant 32 : i32
    %22 = vector.broadcast %c32_i32_8 : i32 to vector<8x128xi32>
    %23 = arith.cmpi slt, %0, %22 : vector<8x128xi32>
    %cst_9 = arith.constant 0.000000e+00 : f32
    %24 = vector.broadcast %cst_9 : f32 to vector<8x128xf32>
    %25 = arith.select %23, %21, %24 : vector<8x128xi1>, vector<8x128xf32>
    %26 = arith.addf %18, %25 : vector<8x128xf32>
    %cst_10 = arith.constant dense<0.000000e+00> : vector<8xf32>
    %27 = vector.multi_reduction <add>, %26, %cst_10 [1] : vector<8x128xf32> to vector<8xf32>
    %28 = vector.shape_cast %27 : vector<8xf32> to vector<8x1xf32>
    %cst_11 = arith.constant dense<0.000000e+00> : vector<8xf32>
    %29 = vector.multi_reduction <add>, %13, %cst_11 [1] : vector<8x128xf32> to vector<8xf32>
    %30 = vector.shape_cast %29 : vector<8xf32> to vector<8x1xf32>
    %31 = math.log %28 : vector<8x1xf32>
    %32 = arith.addf %15, %31 : vector<8x1xf32>
    %33 = arith.subf %32, %30 : vector<8x1xf32>
    %c0_12 = arith.constant 0 : index
    %c0_13 = arith.constant 0 : index
    %34 = vector.load %arg3[%c0_12, %c0_13] : memref<8x1xf32, #tpu.memory_space<vmem>>, vector<8x1xf32>
    tpu.vector_store %arg3[%c0_12, %c0_13], %33 {strides = array<i32>} : memref<8x1xf32, #tpu.memory_space<vmem>>, vector<8x1xf32>,
    return
  }
  func.func @transform_0(%arg0: i32) -> (i32, i32) {
    %c0_i32 = arith.constant 0 : i32
    %c0_i32_0 = arith.constant 0 : i32
    return %arg0, %c0_i32 : i32, i32
  }
  func.func @transform_1(%arg0: i32) -> (i32, i32) {
    %c0_i32 = arith.constant 0 : i32
    %c0_i32_0 = arith.constant 0 : i32
    return %arg0, %c0_i32 : i32, i32
  }
  func.func @transform_2(%arg0: i32) -> (i32, i32) {
    %c0_i32 = arith.constant 0 : i32
    %c0_i32_0 = arith.constant 0 : i32
    return %arg0, %c0_i32 : i32, i32
  }
}

</mosaic_0001>

<bundles_post_ra>
// kernel: tpu_custom_call.1
= control target key start
LH: loop header
LB: loop body
LE: loop exit
PB: predicated region body
PF: predicated region fallthrough
CT: control target
= control target key end

     0   :  { %v11_v0 = vlaneseq  ;;  %v50_v1 = vmov 0   ;;  %vm38_vm2 = vcmask 7168   ;;  %s75_s0 = inlined_call_operand.vmem [shape: f32[8,32], index: 0, kind: input, shape index: {}]   ;;  %s76_s1 = inlined_call_operand.vmem [shape: s32[8,1], index: 1, kind: input, shape index: {}]   ;;  %s77_s2 = inlined_call_operand.vmem [shape: f32[8,1], index: 2, kind: output, shape index: {}]  }
   0x1   :  { %45 = vset.pattern.permute.xlu0 %v50_v1  ;;  %v18_v3 = vld [vmem:[%s75_s0] sm:$0xff] }
   0x2   :  { %v12_v2 = vand.u32 127, %v11_v0  ;;  %v13_v5 = vld [vmem:[%s76_s1] sm:$0xff] }
   0x4   :  { %vm19_vm0 = vcmp.lt.s32.totalorder %v12_v2, 32 }
   0x5   :  { %v20_v4 = vsel %vm19_vm0, %v18_v3, -inf }
   0x6   :  { %23 = vmax.xlane.f32.xlu0 %v20_v4 }
  0x1a   :  { %15 = vperm.xlu0 %45, %v13_v5  }
  0x79   :  { %v24_v6 = vpop.xlane.xlu0 %23 }
  0x7a   :  { %v25_v7 = vsub.f32 %v18_v3, %v24_v6 }
  0x7c   :  { %v26_v8 = vmul.f32 1.442695, %v25_v7 }
  0x7e   :  { %46 = vpow2.f32 %v26_v8 }
  0x84   :  { %v47_v9 = vpop.eup %46 }
  0x85   :  { %v28_v10 = vsel %vm19_vm0, %v47_v9, 0.0 }
  0x86   :  { %30 = vadd.xlane.f32.xlu1 %v28_v10 }
  0x8c   :  { %v16_v11 = vpop.permute.xlu0 %15 }
  0x8d   :  { %v17_v12 = vsub.s32 %v16_v11, %v12_v2 }
  0x8f   :  { %vm21_vm1 = vcmp.eq.s32.totalorder %v17_v12, 0 }
  0x90   :  { %v22_v13 = vsel %vm21_vm1, %v18_v3, 0.0 }
  0x91   :  { %32 = vadd.xlane.f32.xlu1 %v22_v13 }
  0xf9   :  { %v31_v14 = vpop.xlane.xlu1 %30 }
  0xfa   :  { %48 = vlog2.f32 %v31_v14 }
 0x100   :  { %v49_v15 = vpop.eup %48 }
 0x101   :  { %v35_v16 = vmul.f32 0.6931472, %v49_v15 }
 0x103   :  { %v36_v17 = vadd.f32 %v35_v16, %v24_v6 }
 0x104   :  { %v33_v18 = vpop.xlane.xlu1 %32 }
 0x105   :  { %v37_v19 = vsub.f32 %v36_v17, %v33_v18 }
 0x107   :  { %39 = vst.msk [vmem:[%s77_s2] sm:$0xff] %vm38_vm2, %v37_v19 }

</bundles_post_ra>
